<compile_context>
chip_gen: v7x
topology: tpu7x:2x2x1
jax: 0.10.0
libtpu: 0.0.40
codegen_flags: <defaults>
</compile_context>

<pallas_src>
import jax
import jax.numpy as jnp
from jax.experimental import pallas as pl
from jax.experimental.pallas import tpu as pltpu

# ---- static, import-time feature / hardware detection -----------------------
_HAS_BUFFERED = hasattr(pl, "Buffered")
_CONST_SPEC_KW = dict(pipeline_mode=pl.Buffered(1)) if _HAS_BUFFERED else {}


def _vmem_capacity_bytes():
    try:
        return int(pltpu.get_tpu_info().vmem_capacity_bytes)
    except Exception:
        return 128 << 20  # conservative v5e/v6e default


_VMEM_CAPACITY = _vmem_capacity_bytes()


# ---- kernel ------------------------------------------------------------------
def gating_kernel(x_ref, w_ref, b_ref, o_ref):
    # logits = x @ W + b ; W pre-transposed to [D, E] -> canonical MXU [M,K]x[K,N].
    logits = jnp.dot(x_ref[...], w_ref[...],
                     preferred_element_type=jnp.float32) + b_ref[...]
    # Numerically stable softmax over the expert axis.
    m = jnp.max(logits, axis=-1, keepdims=True)
    e = jnp.exp(logits - m)
    denom = jnp.sum(e, axis=-1, keepdims=True)
    r = pl.reciprocal(denom, approx=True)   # EUP vrcp (free slot next to exp)
    r = r * (2.0 - denom * r)               # one Newton step -> ~f32 accuracy
    o_ref[...] = (e * r).astype(o_ref.dtype)


# ---- tiling / VMEM sizing ----------------------------------------------------
def _round_up(n, m):
    return ((n + m - 1) // m) * m


def _choose_tm(B, D, E, x_itemsize, out_itemsize, weight_bytes):
    # Budget ~75% of physical per-TC VMEM, minus the resident (single-buffered)
    # weight, for the pipelined x/out tiles.
    budget = (_VMEM_CAPACITY * 3) // 4
    avail = max(budget - weight_bytes, 1 << 20)
    # Steady-state per-row bytes: double-buffered x tile + double-buffered out tile.
    per_row = max(1, 2 * D * x_itemsize + 2 * E * out_itemsize)
    tm_vmem = max(8, (avail // per_row) // 8 * 8)
    # Single block when the whole batch fits; otherwise large tiles (<= 1024 rows)
    # to amortize the ~0.35 us per-step grid overhead.
    return int(min(_round_up(B, 8), 1024, tm_vmem))


# ---- wrapper -----------------------------------------------------------------
@jax.jit
def gating_network(x, weight, bias):
    """x: [B, D]; weight: [E, D] (PyTorch nn.Linear layout); bias: [E]."""
    B, D = x.shape
    E = weight.shape[0]

    w_t = weight.T            # one-time wrapper-side transpose -> [D, E]
    b2 = bias.reshape(1, E)

    x_sz = jnp.dtype(x.dtype).itemsize
    w_sz = jnp.dtype(weight.dtype).itemsize
    b_sz = jnp.dtype(bias.dtype).itemsize
    o_sz = x_sz
    weight_bytes = D * E * w_sz

    tm = _choose_tm(B, D, E, x_sz, o_sz, weight_bytes)
    grid = (pl.cdiv(B, tm),)

    # Accurate steady-state VMEM footprint + 25% headroom, capped well below
    # physical capacity (v7x only has 64 MiB per TensorCore).
    n_const_buf = 1 if _HAS_BUFFERED else 2
    steady = (2 * tm * D * x_sz                      # x tile, double-buffered
              + 2 * tm * E * o_sz                    # out tile, double-buffered
              + n_const_buf * (weight_bytes + E * b_sz))
    vmem_limit = int(min(max(steady * 5 // 4, 8 << 20),
                         (_VMEM_CAPACITY * 4) // 5))

    grid_spec = pltpu.PrefetchScalarGridSpec(
        num_scalar_prefetch=0,
        grid=grid,
        in_specs=[
            pl.BlockSpec((tm, D), lambda i: (i, 0)),                   # x row-tile
            pl.BlockSpec((D, E), lambda i: (0, 0), **_CONST_SPEC_KW),  # full weight [D,E]
            pl.BlockSpec((1, E), lambda i: (0, 0), **_CONST_SPEC_KW),  # full bias
        ],
        out_specs=pl.BlockSpec((tm, E), lambda i: (i, 0)),
    )
    return pl.pallas_call(
        gating_kernel,
        out_shape=jax.ShapeDtypeStruct((B, E), x.dtype),
        grid_spec=grid_spec,
        compiler_params=pltpu.CompilerParams(
            dimension_semantics=("parallel",),
            vmem_limit_bytes=vmem_limit,
        ),
    )(x, w_t, b2)


# ---- demo / correctness check ------------------------------------------------
if __name__ == "__main__":
    # Small shapes consistent with GatingNetwork(input_dim=32, num_experts=8).
    batch, input_dim, num_experts = 16, 32, 8

    key = jax.random.PRNGKey(0)
    kx, kw, kb = jax.random.split(key, 3)

    x = jax.random.normal(kx, (batch, input_dim), dtype=jnp.float32)
    # Mimic nn.Linear's uniform(-1/sqrt(D), 1/sqrt(D)) init, deterministically.
    bound = 1.0 / (input_dim ** 0.5)
    weight = jax.random.uniform(kw, (num_experts, input_dim),
                                minval=-bound, maxval=bound, dtype=jnp.float32)
    bias = jax.random.uniform(kb, (num_experts,),
                              minval=-bound, maxval=bound, dtype=jnp.float32)

    out = jax.block_until_ready(gating_network(x, weight, bias))

    # Reference check in plain JAX.
    ref = jax.nn.softmax(x @ weight.T + bias, axis=-1)
    assert out.shape == (batch, num_experts)
    assert jnp.allclose(out, ref, atol=1e-4, rtol=1e-4)
    assert jnp.allclose(jnp.sum(out, axis=-1), 1.0, atol=1e-4)

    print("KERNEL_OK")
</pallas_src>

<mosaic_0001>
module attributes {stable_mosaic.version = 11 : i64} {
  func.func @gating_kernel(%arg0: i32, %arg1: memref<16x32xf32, #tpu.memory_space<vmem>>, %arg2: memref<32x8xf32, #tpu.memory_space<vmem>>, %arg3: memref<1x8xf32, #tpu.memory_space<vmem>>, %arg4: memref<16x8xf32, #tpu.memory_space<vmem>>) attributes {dimension_semantics = [#tpu.dimension_semantics<parallel>], iteration_bounds = array<i64: 1>, scalar_prefetch = 0 : i64, scratch_operands = 0 : i64, tpu.core_type = #tpu.core_type<tc>, window_params = [{transform_indices = @transform_0, window_bounds = array<i64: 16, 32>}, {pipeline_mode = #tpu.pipeline_mode<synchronous>, transform_indices = @transform_1, window_bounds = array<i64: 32, 8>}, {pipeline_mode = #tpu.pipeline_mode<synchronous>, transform_indices = @transform_2, window_bounds = array<i64: 1, 8>}, {transform_indices = @transform_3, window_bounds = array<i64: 16, 8>}]} {
    %c0 = arith.constant 0 : index
    %c0_0 = arith.constant 0 : index
    %0 = vector.load %arg1[%c0, %c0_0] : memref<16x32xf32, #tpu.memory_space<vmem>>, vector<16x32xf32>
    %c0_1 = arith.constant 0 : index
    %c0_2 = arith.constant 0 : index
    %1 = vector.load %arg2[%c0_1, %c0_2] : memref<32x8xf32, #tpu.memory_space<vmem>>, vector<32x8xf32>
    %cst = arith.constant dense<0.000000e+00> : vector<16x8xf32>
    %2 = tpu.matmul %0, %1, %cst {dimension_numbers = #tpu.dot_dimension_numbers<[1], [0], [0], [1], [0, 0, 1, 1], [], []>} : vector<16x32xf32>, vector<32x8xf32>, vector<16x8xf32> -> vector<16x8xf32>
    %c0_3 = arith.constant 0 : index
    %c0_4 = arith.constant 0 : index
    %3 = vector.load %arg3[%c0_3, %c0_4] : memref<1x8xf32, #tpu.memory_space<vmem>>, vector<1x8xf32>
    %4 = vector.broadcast %3 : vector<1x8xf32> to vector<16x8xf32>
    %5 = arith.addf %2, %4 : vector<16x8xf32>
    %cst_5 = arith.constant dense<0xFF800000> : vector<16xf32>
    %6 = vector.multi_reduction <maximumf>, %5, %cst_5 [1] : vector<16x8xf32> to vector<16xf32>
    %7 = vector.shape_cast %6 : vector<16xf32> to vector<16x1xf32>
    %8 = vector.broadcast %7 : vector<16x1xf32> to vector<16x8xf32>
    %9 = arith.subf %5, %8 : vector<16x8xf32>
    %10 = math.exp %9 : vector<16x8xf32>
    %cst_6 = arith.constant dense<0.000000e+00> : vector<16xf32>
    %11 = vector.multi_reduction <add>, %10, %cst_6 [1] : vector<16x8xf32> to vector<16xf32>
    %12 = vector.shape_cast %11 : vector<16xf32> to vector<16x1xf32>
    %13 = tpu.reciprocal %12 {approx = true} : vector<16x1xf32> -> vector<16x1xf32>
    %14 = arith.mulf %12, %13 : vector<16x1xf32>
    %cst_7 = arith.constant 2.000000e+00 : f32
    %15 = vector.broadcast %cst_7 : f32 to vector<16x1xf32>
    %16 = arith.subf %15, %14 : vector<16x1xf32>
    %17 = arith.mulf %13, %16 : vector<16x1xf32>
    %18 = vector.broadcast %17 : vector<16x1xf32> to vector<16x8xf32>
    %19 = arith.mulf %10, %18 : vector<16x8xf32>
    %c0_8 = arith.constant 0 : index
    %c0_9 = arith.constant 0 : index
    %20 = vector.load %arg4[%c0_8, %c0_9] : memref<16x8xf32, #tpu.memory_space<vmem>>, vector<16x8xf32>
    tpu.vector_store %arg4[%c0_8, %c0_9], %19 {strides = array<i32>} : memref<16x8xf32, #tpu.memory_space<vmem>>, vector<16x8xf32>,
    return
  }
  func.func @transform_0(%arg0: i32) -> (i32, i32) {
    %c0_i32 = arith.constant 0 : i32
    %c0_i32_0 = arith.constant 0 : i32
    return %arg0, %c0_i32 : i32, i32
  }
  func.func @transform_1(%arg0: i32) -> (i32, i32) {
    %c0_i32 = arith.constant 0 : i32
    %c0_i32_0 = arith.constant 0 : i32
    %c0_i32_1 = arith.constant 0 : i32
    return %c0_i32, %c0_i32_0 : i32, i32
  }
  func.func @transform_2(%arg0: i32) -> (i32, i32) {
    %c0_i32 = arith.constant 0 : i32
    %c0_i32_0 = arith.constant 0 : i32
    %c0_i32_1 = arith.constant 0 : i32
    return %c0_i32, %c0_i32_0 : i32, i32
  }
  func.func @transform_3(%arg0: i32) -> (i32, i32) {
    %c0_i32 = arith.constant 0 : i32
    %c0_i32_0 = arith.constant 0 : i32
    return %arg0, %c0_i32 : i32, i32
  }
}

</mosaic_0001>

<bundles_post_ra>
// kernel: gating_network.1
= control target key start
LH: loop header
LB: loop body
LE: loop exit
PB: predicated region body
PF: predicated region fallthrough
CT: control target
= control target key end

     0   :  { %vm27_vm0 = vcmask 261120   ;;  %vm109_vm1 = vcmask 64512   ;;  %s233_s1 = inlined_call_operand.vmem [shape: f32[32,8], index: 1, kind: input, shape index: {}]   ;;  %s234_s0 = inlined_call_operand.vmem [shape: f32[16,32], index: 0, kind: input, shape index: {}]   ;;  %s235_s2 = inlined_call_operand.vmem [shape: f32[1,8], index: 2, kind: input, shape index: {}]   ;;  %s236_s3 = inlined_call_operand.vmem [shape: f32[16,8], index: 3, kind: output, shape index: {}]  }
   0x1   :  { %v16_v0 = vld [vmem:[%s233_s1] sm:$0xff]  ;;  %v17_v1 = vld [vmem:[%s233_s1 + $0x8] sm:$0xff]  ;;  %v18_v2 = vld [vmem:[%s233_s1 + $0x10] sm:$0xff] }
   0x2   :  { %v164_v3 = vpack.c.bf16 %v17_v1, %v16_v0  ;;  %v19_v4 = vld [vmem:[%s233_s1 + $0x18] sm:$0xff]  ;;  %v14_v5 = vld [vmem:[%s234_s0] sm:$0xff]  ;;  %v15_v7 = vld [vmem:[%s234_s0 + $0x8] sm:$0xff] }
   0x3   :  { %v168_v6 = vpack.c.bf16 %v19_v4, %v18_v2  ;;  %161 = vmatprep.mubr.msk.f32.mxu0 %vm27_vm0, %v14_v5  ;;  %v144_v8 = vld [vmem:[%s235_s2] ss:$0 sm:$0xff] }
   0x4   :  { %165 = vmatprep.subr.bf16.mxu0 %v164_v3 }
   0x5   :  { %167 = vmatpush3.bf16.msra.mxu0 %v164_v3 }
   0x6   :  { %169 = vmatprep.subr.bf16.mxu0 %v168_v6 }
   0x9   :  { %171 = vmatpush3.bf16.msra.mxu0 %v168_v6 }
   0xc   :  { %162 = vmatmul.mubr.msk.f32.vlgmr.msra.gmra.mrb[0].mxu0 %vm27_vm0, %v15_v7 }
  0xdf   :  { %v163_v9 = vpop.f32.mrb[0].mxu0 }
  0xe0   :  { %v100_v10 = vpop.f32.mrb[1].mxu0  ;;  %v106_v12 = vadd.f32 %v163_v9, %v144_v8 }
  0xe1   :  { %v101_v11 = vadd.f32 %v144_v8, %v100_v10 }
  0xe2   :  { %v113_v14 = vsel %vm109_vm1, %v106_v12, -inf }
  0xe3   :  { %v110_v13 = vsel %vm109_vm1, %v101_v11, -inf }
  0xe4   :  { %111 = vmax.xlane.f32.xlu0 %v110_v13 }
  0xe8   :  { %114 = vmax.xlane.f32.xlu0 %v113_v14 }
 0x171   :  { %v112_v15 = vpop.xlane.xlu0 %111 }
 0x172   :  { %v116_v16 = vsub.f32 %v101_v11, %v112_v15 }
 0x174   :  { %v118_v17 = vmul.f32 1.442695, %v116_v16 }
 0x175   :  { %v115_v18 = vpop.xlane.xlu0 %114 }
 0x176   :  { %172 = vpow2.f32 %v118_v17  ;;  %v117_v19 = vsub.f32 %v106_v12, %v115_v18 }
 0x178   :  { %v120_v20 = vmul.f32 1.442695, %v117_v19 }
 0x17a   :  { %174 = vpow2.f32 %v120_v20 }
 0x180   :  { %v173_v21 = vpop.eup %172 }
 0x181   :  { %v122_v22 = vsel %vm109_vm1, %v173_v21, 0.0 }
 0x182   :  { %123 = vadd.xlane.f32.xlu1 %v122_v22 }
 0x184   :  { %v175_v23 = vpop.eup %174 }
 0x185   :  { %v125_v24 = vsel %vm109_vm1, %v175_v23, 0.0 }
 0x186   :  { %126 = vadd.xlane.f32.xlu1 %v125_v24 }
 0x20f   :  { %v124_v25 = vpop.xlane.xlu1 %123 }
 0x210   :  { %176 = vrcp.f32 %v124_v25 }
 0x213   :  { %v127_v26 = vpop.xlane.xlu1 %126 }
 0x214   :  { %178 = vrcp.f32 %v127_v26 }
 0x21a   :  { %v177_v27 = vpop.eup %176 }
 0x21b   :  { %v130_v28 = vmul.f32 %v177_v27, %v124_v25 }
 0x21d   :  { %v132_v29 = vsub.f32 2.0, %v130_v28 }
 0x21e   :  { %v179_v30 = vpop.eup %178 }
 0x21f   :  { %v134_v31 = vmul.f32 %v177_v27, %v132_v29  ;;  %v131_v32 = vmul.f32 %v179_v30, %v127_v26 }
 0x221   :  { %v136_v33 = vmul.f32 %v173_v21, %v134_v31  ;;  %v133_v34 = vsub.f32 2.0, %v131_v32 }
 0x223   :  { %138 = vst.msk [vmem:[%s236_s3] sm:$0xff] %vm109_vm1, %v136_v33  ;;  %v135_v35 = vmul.f32 %v179_v30, %v133_v34 }
 0x225   :  { %v137_v36 = vmul.f32 %v175_v23, %v135_v35 }
 0x227   :  { %139 = vst.msk [vmem:[%s236_s3 + $0x8] sm:$0xff] %vm109_vm1, %v137_v36 }

</bundles_post_ra>
